<compile_context>
chip_gen: v7x
topology: tpu7x:2x2x1
jax: 0.10.0
libtpu: 0.0.40
codegen_flags: <defaults>
</compile_context>

<pallas_src>
import functools

import jax
import jax.numpy as jnp
from jax.experimental import pallas as pl
from jax.experimental.pallas import tpu as pltpu


def _round_up(x, m):
    return (x + m - 1) // m * m


# ---------------------------------------------------------------------------
# Kernel
# ---------------------------------------------------------------------------
def _linear_classifier_kernel(*args, nb, feat_dim, feat_pad, n_tokens,
                              token_tile, needs_token_mask):
    """Fused avgpool-over-tokens + block-concat + Linear head.

    args = (x_ref_0..x_ref_{nb-1},  # [TB, TN, D]       native-dtype streamed tiles
            w_ref,                  # [nb*Dp, Cp]        resident weight
            b_ref,                  # [1, Cp]   f32      resident bias
            o_ref,                  # [TB, Cp]  f32      logits (revisited over tokens)
            acc_ref)                # [TB, nb*Dp] f32    pooled-sum scratch
    """
    x_refs = args[:nb]
    w_ref = args[nb]
    b_ref = args[nb + 1]
    o_ref = args[nb + 2]
    acc_ref = args[nb + 3]

    k = pl.program_id(1)                    # token (reduction) grid axis, last
    last_k = pl.num_programs(1) - 1

    @pl.when(k == 0)
    def _init():
        acc_ref[...] = jnp.zeros_like(acc_ref)

    def accumulate(mask_last_tile):
        # f32 token-sum per block; each block writes its own lane-aligned
        # [TB, D] slab of the scratch (feat_pad is a multiple of 128).
        if mask_last_tile:
            rem = n_tokens % token_tile      # static, > 0 on this path
            local = jax.lax.broadcasted_iota(jnp.int32, (1, token_tile, 1), 1)
            valid = local < rem              # [1, TN, 1] - broadcast over TB and D
        for blk in range(nb):
            xb = x_refs[blk][...].astype(jnp.float32)        # [TB, TN, D]
            if mask_last_tile:
                xb = jnp.where(valid, xb, 0.0)               # drop padded tokens
            off = blk * feat_pad
            acc_ref[:, off:off + feat_dim] += jnp.sum(xb, axis=1)

    if needs_token_mask:
        # Only the last (partial) token tile pays for the mask.
        @pl.when(k != last_k)
        def _full_tiles():
            accumulate(False)

        @pl.when(k == last_k)
        def _partial_tile():
            accumulate(True)
    else:
        accumulate(False)

    @pl.when(k == last_k)
    def _finalize():
        pooled = acc_ref[...] * (1.0 / n_tokens)             # mean with the true N
        w_mat = w_ref[...]
        if w_mat.dtype != jnp.float32:                       # bf16 weight path (opt-in/auto)
            pooled = pooled.astype(w_mat.dtype)
        logits = jnp.dot(pooled, w_mat, preferred_element_type=jnp.float32)
        o_ref[...] = logits + b_ref[...]                     # bias added exactly once


# ---------------------------------------------------------------------------
# Generation-aware tile / budget selection
# ---------------------------------------------------------------------------
def _tpu_vmem_and_generation():
    """Return (vmem_capacity_bytes, tpu_generation) with conservative fallbacks."""
    gen = 6
    try:
        kind = jax.devices()[0].device_kind.lower()
        for g in (7, 6, 5, 4, 3):
            if str(g) in kind:
                gen = g
                break
    except Exception:
        pass
    vmem = None
    try:
        vmem = int(pltpu.get_tpu_info().vmem_capacity_bytes)
    except Exception:
        vmem = None
    if vmem is None or vmem <= 0:
        vmem = 64 * 2 ** 20 if gen >= 7 else 128 * 2 ** 20   # v7x: 64 MiB/TC, else 128 MiB
    return vmem, gen


def _choose_tiles(nb, batch, n_tokens, feat_dim, feat_pad, c_pad,
                  x_itemsize, w_itemsize, gen, budget, buffers):
    """Pick (batch_tile, token_tile).

    Policy:
      * large starting caps (tb<=256, tn<=512); a small candidate search shrinks tb/tn
        in a balanced way only when the honest VMEM estimate exceeds the budget;
      * prefer tiles whose per-grid-step HBM traffic clears the per-generation target
        (~3 MiB v5e / ~5 MiB v6e / ~11 MiB v7x) so the ~0.35 us/step overhead stays <~10%;
      * on v7x (2 TCs; batch is the only "parallel" axis) prefer >=2 (ideally an even
        number of) batch tiles so both cores get work.
    """
    tok_unit = 8 * max(1, 4 // x_itemsize)   # 8 f32 / 16 bf16 / 32 int8 sublane packing

    tb_cands = sorted({v for v in (8, 16, 32, 64, 128, 256) if v <= batch}
                      | ({batch} if batch <= 256 else set()))
    if not tb_cands:
        tb_cands = [batch]
    tn_cands = sorted({v for v in (tok_unit, 2 * tok_unit, 4 * tok_unit,
                                   64, 128, 256, 512)
                       if v <= n_tokens and v % tok_unit == 0}
                      | ({n_tokens} if n_tokens <= 512 else set()))
    if not tn_cands:
        tn_cands = [n_tokens]

    # Tile-independent residents.  BlockSpec double-buffers even with a constant
    # index_map, hence the 2x on the weight / bias.
    fixed = 2 * nb * feat_pad * c_pad * w_itemsize + 2 * c_pad * 4

    def usage(tb, tn):
        u = (buffers * nb * tb * tn * feat_dim * x_itemsize  # streamed x tiles
             + 2 * tb * tn * feat_dim * 4                    # f32 upcast temporaries (bounded)
             + tb * nb * feat_pad * 4                        # f32 pooled-sum scratch
             + 2 * tb * c_pad * 4                            # double-buffered f32 output
             + fixed)
        return int(u * 1.15)                                 # ~15% safety margin

    def traffic(tb, tn):                                     # HBM bytes per grid step
        return nb * tb * tn * feat_dim * x_itemsize

    target = {5: 3, 6: 5, 7: 11}.get(gen, 5) * 2 ** 20

    best_key, best = None, (tb_cands[0], tn_cands[0])
    for tb in tb_cands:
        for tn in tn_cands:
            fits = usage(tb, tn) <= budget
            n_btiles = -(-batch // tb)
            split_ok = (gen < 7) or (batch < 16) or (n_btiles >= 2)
            even_ok = (gen < 7) or (n_btiles % 2 == 0) or (n_btiles == 1)
            key = (1 if fits else 0,
                   1 if split_ok else 0,
                   (1 if traffic(tb, tn) >= target else 0) if fits else 0,
                   1 if even_ok else 0,
                   tb * tn if fits else -usage(tb, tn))      # biggest fitting / smallest overflow
            if best_key is None or key > best_key:
                best_key, best = key, (tb, tn)
    return best


# ---------------------------------------------------------------------------
# Jitted forward (weight prep + pallas_call + output slice all fused)
# ---------------------------------------------------------------------------
@functools.partial(
    jax.jit,
    static_argnames=("nb", "feat_dim", "feat_pad", "num_classes", "c_pad",
                     "tb", "tn", "x_buffers", "w_dtype", "vmem_limit"))
def _forward_jit(xs, weight, bias, *, nb, feat_dim, feat_pad, num_classes,
                 c_pad, tb, tn, x_buffers, w_dtype, vmem_limit):
    B, N, D = xs[0].shape
    w_dtype = jnp.dtype(w_dtype)
    x_itemsize = jnp.dtype(xs[0].dtype).itemsize

    # Lane-dense, per-block K-padded weight [nb*Dp, Cp]; the padded K rows are zero
    # and line up against the zero-padded accumulator columns, so one dot over
    # K = nb*Dp is exact.
    w_blocks = weight.T.reshape(nb, feat_dim, num_classes).astype(w_dtype)
    w_k = jnp.zeros((nb, feat_pad, c_pad), w_dtype)
    w_k = w_k.at[:, :feat_dim, :num_classes].set(w_blocks)
    w_k = w_k.reshape(nb * feat_pad, c_pad)
    b_k = jnp.zeros((1, c_pad), jnp.float32).at[0, :num_classes].set(
        bias.astype(jnp.float32))

    needs_token_mask = (N % tn) != 0
    grid = (pl.cdiv(B, tb), pl.cdiv(N, tn))

    kernel = functools.partial(
        _linear_classifier_kernel,
        nb=nb, feat_dim=feat_dim, feat_pad=feat_pad, n_tokens=N, token_tile=tn,
        needs_token_mask=needs_token_mask)

    if x_buffers > 2:
        # Deeper x-stream pipelining (useful on 128 MiB-VMEM parts if DMA jitter
        # is visible); default depth 2 elsewhere.
        x_spec = pl.BlockSpec((tb, tn, D), lambda i, k: (i, k, 0),
                              pipeline_mode=pl.Buffered(x_buffers))
    else:
        x_spec = pl.BlockSpec((tb, tn, D), lambda i, k: (i, k, 0))
    w_spec = pl.BlockSpec((nb * feat_pad, c_pad), lambda i, k: (0, 0))   # resident
    b_spec = pl.BlockSpec((1, c_pad), lambda i, k: (0, 0))               # resident

    cost = pl.CostEstimate(
        flops=2 * B * (nb * feat_pad) * c_pad + nb * B * N * D,
        transcendentals=0,
        bytes_accessed=nb * B * N * D * x_itemsize
        + nb * feat_pad * c_pad * w_dtype.itemsize + B * c_pad * 4 + c_pad * 4)

    out = pl.pallas_call(
        kernel,
        out_shape=jax.ShapeDtypeStruct((B, c_pad), jnp.float32),
        grid_spec=pltpu.PrefetchScalarGridSpec(
            num_scalar_prefetch=0,
            grid=grid,
            in_specs=[x_spec] * nb + [w_spec, b_spec],
            out_specs=pl.BlockSpec((tb, c_pad), lambda i, k: (i, 0)),
            scratch_shapes=[pltpu.VMEM((tb, nb * feat_pad), jnp.float32)]),
        compiler_params=pltpu.CompilerParams(
            dimension_semantics=("parallel", "arbitrary"),
            vmem_limit_bytes=vmem_limit),
        cost_estimate=cost,
    )(*xs, w_k, b_k)

    return out[:, :num_classes]


# ---------------------------------------------------------------------------
# Public wrapper
# ---------------------------------------------------------------------------
def linear_classifier_forward(x_tokens_list, weight, bias, *,
                              batch_tile=None, token_tile=None,
                              weight_dtype=None, x_buffers=2):
    """Forward of LinearClassifier (avgpool over tokens, concat blocks, Linear).

    x_tokens_list: list/tuple of `use_n_blocks` arrays, each [B, N, D] (native dtype)
    weight:        [C, nb*D]  nn.Linear weight (PyTorch layout)
    bias:          [C]        nn.Linear bias
    weight_dtype:  None = auto (f32 unless the resident f32 weight would crowd out
                   the x-stream tiles, e.g. big heads on v7x), or jnp.float32/bfloat16
    returns:       [B, C] float32 logits
    """
    xs = tuple(x_tokens_list)
    nb = len(xs)
    B, N, D = xs[0].shape
    for x in xs:
        assert x.shape == (B, N, D), "all block outputs must share [B, N, D]"
        assert x.dtype == xs[0].dtype, "all block outputs must share a dtype"
    C = weight.shape[0]
    assert weight.shape == (C, nb * D)
    assert bias.shape == (C,)

    feat_pad = _round_up(D, 128)     # lane-aligned per-block accumulator/weight-K slab
    c_pad = _round_up(C, 128)        # lane-dense weight / output

    x_itemsize = jnp.dtype(xs[0].dtype).itemsize
    tok_unit = 8 * max(1, 4 // x_itemsize)

    vmem_cap, gen = _tpu_vmem_and_generation()
    budget = int(vmem_cap * (0.55 if gen >= 7 else 0.60))    # ~35 MiB v7x / ~76 MiB v5e-v6e
    vmem_limit = int(vmem_cap * 0.75)                        # ~48 MiB v7x / ~96 MiB v5e-v6e

    if weight_dtype is None:
        # Auto: bf16 (~2^-8 relative logit change) only when the double-buffered f32
        # weight would eat >1/3 of the tile budget; otherwise exact f32.
        w_f32_resident = 2 * nb * feat_pad * c_pad * 4
        weight_dtype = jnp.bfloat16 if w_f32_resident > budget // 3 else jnp.float32
    w_dtype = jnp.dtype(weight_dtype)

    buffers = max(2, int(x_buffers))
    tb, tn = _choose_tiles(nb, B, N, D, feat_pad, c_pad, x_itemsize,
                           w_dtype.itemsize, gen, budget, buffers)

    # Validated user overrides (sublane / full-dim rule).
    if batch_tile is not None:
        if not (batch_tile == B or (batch_tile % 8 == 0 and 0 < batch_tile <= B)):
            raise ValueError("batch_tile must equal B or be a multiple of 8 <= B")
        tb = int(batch_tile)
    if token_tile is not None:
        if not (token_tile == N or (token_tile % tok_unit == 0 and 0 < token_tile <= N)):
            raise ValueError(
                f"token_tile must equal N or be a multiple of {tok_unit} <= N")
        tn = int(token_tile)

    return _forward_jit(xs, weight, bias,
                        nb=nb, feat_dim=D, feat_pad=feat_pad, num_classes=C,
                        c_pad=c_pad, tb=int(tb), tn=int(tn),
                        x_buffers=int(x_buffers), w_dtype=w_dtype.name,
                        vmem_limit=int(vmem_limit))


def _reference_forward(x_tokens_list, weight, bias):
    """Pure-JAX reference mirroring the PyTorch module (avgpool, concat, Linear)."""
    pooled = [jnp.mean(x.astype(jnp.float32), axis=1) for x in x_tokens_list]
    feats = jnp.concatenate(pooled, axis=-1)              # [B, nb*D]
    # norm = Identity
    return feats @ weight.T.astype(jnp.float32) + bias.astype(jnp.float32)


if __name__ == "__main__":
    key = jax.random.PRNGKey(0)
    kx, kw, kx2, kw2, kb2 = jax.random.split(key, 5)

    # Case 1: small shapes consistent with the module - use_n_blocks=2 frozen block
    # outputs (bf16, streamed without upcast), batch=2, 8 tokens, hidden=32, 10 classes.
    nb, B, N, D, C = 2, 2, 8, 32, 10
    x_keys = jax.random.split(kx, nb)
    x_tokens_list = [
        jax.random.normal(x_keys[i], (B, N, D), dtype=jnp.float32).astype(jnp.bfloat16)
        for i in range(nb)
    ]
    # Deterministic params matching __init__: weight ~ N(0, 0.01), bias = 0.
    weight = 0.01 * jax.random.normal(kw, (C, nb * D), dtype=jnp.float32)
    bias = jnp.zeros((C,), dtype=jnp.float32)

    out = jax.block_until_ready(linear_classifier_forward(x_tokens_list, weight, bias))
    ref = _reference_forward(x_tokens_list, weight, bias)
    assert out.shape == (B, C)
    assert jnp.allclose(out, ref, atol=1e-4, rtol=1e-4), "case 1 mismatch vs reference"

    # Case 2: exercises batch tiling (parallel grid axis), token-axis reduction tiling
    # with the pl.when accumulator, the mask-on-last-step path (N=12, token_tile=8),
    # the lane-padded accumulator (D=32 -> Dp=128), and a non-zero bias.
    nb2, B2, N2, D2, C2 = 3, 16, 12, 32, 10
    x_keys2 = jax.random.split(kx2, nb2)
    x_list2 = [jax.random.normal(x_keys2[i], (B2, N2, D2), dtype=jnp.float32)
               for i in range(nb2)]
    weight2 = 0.01 * jax.random.normal(kw2, (C2, nb2 * D2), dtype=jnp.float32)
    bias2 = 0.1 * jax.random.normal(kb2, (C2,), dtype=jnp.float32)

    out2 = jax.block_until_ready(
        linear_classifier_forward(x_list2, weight2, bias2,
                                  batch_tile=8, token_tile=8))
    ref2 = _reference_forward(x_list2, weight2, bias2)
    assert out2.shape == (B2, C2)
    assert jnp.allclose(out2, ref2, atol=1e-4, rtol=1e-4), "case 2 mismatch vs reference"

    # TODO(synk): use_additional_1dbatchnorm=True (BatchNorm1d running stats) and custom
    # default_blocks_to_featurevec poolings are not modeled; default avgpool path with
    # norm=nn.Identity only.
    print("KERNEL_OK")
</pallas_src>

<mosaic_0001>
module attributes {stable_mosaic.version = 11 : i64} {
  func.func @_linear_classifier_kernel(%arg0: i32, %arg1: i32, %arg2: memref<2x8x32xbf16, #tpu.memory_space<vmem>>, %arg3: memref<2x8x32xbf16, #tpu.memory_space<vmem>>, %arg4: memref<256x128xf32, #tpu.memory_space<vmem>>, %arg5: memref<1x128xf32, #tpu.memory_space<vmem>>, %arg6: memref<2x128xf32, #tpu.memory_space<vmem>>, %arg7: memref<2x256xf32, #tpu.memory_space<vmem>>) attributes {dimension_semantics = [#tpu.dimension_semantics<parallel>, #tpu.dimension_semantics<arbitrary>], iteration_bounds = array<i64: 1, 1>, scalar_prefetch = 0 : i64, scratch_operands = 1 : i64, tpu.core_type = #tpu.core_type<tc>, window_params = [{transform_indices = @transform_0, window_bounds = array<i64: 2, 8, 32>}, {transform_indices = @transform_1, window_bounds = array<i64: 2, 8, 32>}, {pipeline_mode = #tpu.pipeline_mode<synchronous>, transform_indices = @transform_2, window_bounds = array<i64: 256, 128>}, {pipeline_mode = #tpu.pipeline_mode<synchronous>, transform_indices = @transform_3, window_bounds = array<i64: 1, 128>}, {transform_indices = @transform_4, window_bounds = array<i64: 2, 128>}]} {
    %c0_i32 = arith.constant 0 : i32
    %0 = arith.cmpi eq, %arg1, %c0_i32 : i32
    %1 = arith.extui %0 : i1 to i32
    %c0_i32_0 = arith.constant 0 : i32
    %2 = arith.cmpi ne, %1, %c0_i32_0 : i32
    scf.if %2 {
      %cst_16 = arith.constant 0.000000e+00 : f32
      %18 = vector.broadcast %cst_16 : f32 to vector<2x256xf32>
      %c0_17 = arith.constant 0 : index
      %c0_18 = arith.constant 0 : index
      %19 = vector.load %arg7[%c0_17, %c0_18] : memref<2x256xf32, #tpu.memory_space<vmem>>, vector<2x256xf32>
      tpu.vector_store %arg7[%c0_17, %c0_18], %18 {strides = array<i32>} : memref<2x256xf32, #tpu.memory_space<vmem>>, vector<2x256xf32>,
    } else {
    }
    %c0 = arith.constant 0 : index
    %c0_1 = arith.constant 0 : index
    %c0_2 = arith.constant 0 : index
    %3 = vector.load %arg2[%c0, %c0_1, %c0_2] : memref<2x8x32xbf16, #tpu.memory_space<vmem>>, vector<2x8x32xbf16>
    %4 = arith.extf %3 : vector<2x8x32xbf16> to vector<2x8x32xf32>
    %c0_3 = arith.constant 0 : index
    %c0_4 = arith.constant 0 : index
    %5 = vector.load %arg7[%c0_3, %c0_4] : memref<2x256xf32, #tpu.memory_space<vmem>>, vector<2x32xf32>
    %cst = arith.constant dense<0.000000e+00> : vector<2x32xf32>
    %6 = vector.multi_reduction <add>, %4, %cst [1] : vector<2x8x32xf32> to vector<2x32xf32>
    %7 = arith.addf %5, %6 : vector<2x32xf32>
    %c0_5 = arith.constant 0 : index
    %c0_6 = arith.constant 0 : index
    %8 = vector.load %arg7[%c0_5, %c0_6] : memref<2x256xf32, #tpu.memory_space<vmem>>, vector<2x32xf32>
    tpu.vector_store %arg7[%c0_5, %c0_6], %7 {strides = array<i32>} : memref<2x256xf32, #tpu.memory_space<vmem>>, vector<2x32xf32>,
    %c0_7 = arith.constant 0 : index
    %c0_8 = arith.constant 0 : index
    %c0_9 = arith.constant 0 : index
    %9 = vector.load %arg3[%c0_7, %c0_8, %c0_9] : memref<2x8x32xbf16, #tpu.memory_space<vmem>>, vector<2x8x32xbf16>
    %10 = arith.extf %9 : vector<2x8x32xbf16> to vector<2x8x32xf32>
    %c0_10 = arith.constant 0 : index
    %c128 = arith.constant 128 : index
    %11 = vector.load %arg7[%c0_10, %c128] : memref<2x256xf32, #tpu.memory_space<vmem>>, vector<2x32xf32>
    %cst_11 = arith.constant dense<0.000000e+00> : vector<2x32xf32>
    %12 = vector.multi_reduction <add>, %10, %cst_11 [1] : vector<2x8x32xf32> to vector<2x32xf32>
    %13 = arith.addf %11, %12 : vector<2x32xf32>
    %c0_12 = arith.constant 0 : index
    %c128_13 = arith.constant 128 : index
    %14 = vector.load %arg7[%c0_12, %c128_13] : memref<2x256xf32, #tpu.memory_space<vmem>>, vector<2x32xf32>
    tpu.vector_store %arg7[%c0_12, %c128_13], %13 {strides = array<i32>} : memref<2x256xf32, #tpu.memory_space<vmem>>, vector<2x32xf32>,
    %c0_i32_14 = arith.constant 0 : i32
    %15 = arith.cmpi eq, %arg1, %c0_i32_14 : i32
    %16 = arith.extui %15 : i1 to i32
    %c0_i32_15 = arith.constant 0 : i32
    %17 = arith.cmpi ne, %16, %c0_i32_15 : i32
    scf.if %17 {
      %c0_16 = arith.constant 0 : index
      %c0_17 = arith.constant 0 : index
      %18 = vector.load %arg7[%c0_16, %c0_17] : memref<2x256xf32, #tpu.memory_space<vmem>>, vector<2x256xf32>
      %cst_18 = arith.constant 1.250000e-01 : f32
      %19 = vector.broadcast %cst_18 : f32 to vector<2x256xf32>
      %20 = arith.mulf %18, %19 : vector<2x256xf32>
      %c0_19 = arith.constant 0 : index
      %c0_20 = arith.constant 0 : index
      %21 = vector.load %arg4[%c0_19, %c0_20] : memref<256x128xf32, #tpu.memory_space<vmem>>, vector<256x128xf32>
      %cst_21 = arith.constant dense<0.000000e+00> : vector<2x128xf32>
      %22 = tpu.matmul %20, %21, %cst_21 {dimension_numbers = #tpu.dot_dimension_numbers<[1], [0], [0], [1], [0, 0, 1, 1], [], []>} : vector<2x256xf32>, vector<256x128xf32>, vector<2x128xf32> -> vector<2x128xf32>
      %c0_22 = arith.constant 0 : index
      %c0_23 = arith.constant 0 : index
      %23 = vector.load %arg5[%c0_22, %c0_23] : memref<1x128xf32, #tpu.memory_space<vmem>>, vector<1x128xf32>
      %24 = vector.broadcast %23 : vector<1x128xf32> to vector<2x128xf32>
      %25 = arith.addf %22, %24 : vector<2x128xf32>
      %c0_24 = arith.constant 0 : index
      %c0_25 = arith.constant 0 : index
      %26 = vector.load %arg6[%c0_24, %c0_25] : memref<2x128xf32, #tpu.memory_space<vmem>>, vector<2x128xf32>
      tpu.vector_store %arg6[%c0_24, %c0_25], %25 {strides = array<i32>} : memref<2x128xf32, #tpu.memory_space<vmem>>, vector<2x128xf32>,
    } else {
    }
    return
  }
  func.func @transform_0(%arg0: i32, %arg1: i32) -> (i32, i32, i32) {
    %c0_i32 = arith.constant 0 : i32
    %c0_i32_0 = arith.constant 0 : i32
    return %arg0, %arg1, %c0_i32 : i32, i32, i32
  }
  func.func @transform_1(%arg0: i32, %arg1: i32) -> (i32, i32, i32) {
    %c0_i32 = arith.constant 0 : i32
    %c0_i32_0 = arith.constant 0 : i32
    return %arg0, %arg1, %c0_i32 : i32, i32, i32
  }
  func.func @transform_2(%arg0: i32, %arg1: i32) -> (i32, i32) {
    %c0_i32 = arith.constant 0 : i32
    %c0_i32_0 = arith.constant 0 : i32
    %c0_i32_1 = arith.constant 0 : i32
    return %c0_i32, %c0_i32_0 : i32, i32
  }
  func.func @transform_3(%arg0: i32, %arg1: i32) -> (i32, i32) {
    %c0_i32 = arith.constant 0 : i32
    %c0_i32_0 = arith.constant 0 : i32
    %c0_i32_1 = arith.constant 0 : i32
    return %c0_i32, %c0_i32_0 : i32, i32
  }
  func.func @transform_4(%arg0: i32, %arg1: i32) -> (i32, i32) {
    %c0_i32 = arith.constant 0 : i32
    %c0_i32_0 = arith.constant 0 : i32
    return %arg0, %c0_i32 : i32, i32
  }
}

</mosaic_0001>

<bundles_post_ra>
// kernel: _forward_jit.1
= control target key start
LH: loop header
LB: loop body
LE: loop exit
PB: predicated region body
PF: predicated region fallthrough
CT: control target
= control target key end

     0   :  { %9 = vsyncpa [#allocation4], 0  ;;  %s629_s0 = inlined_call_operand.hbm [shape: bf16[2,8,32], index: 0, kind: input, shape index: {}]   ;;  %s630_s1 = inlined_call_operand.hbm [shape: bf16[2,8,32], index: 1, kind: input, shape index: {}]   ;;  %s631_s2 = inlined_call_operand.hbm [shape: f32[256,128], index: 2, kind: input, shape index: {}]   ;;  %s632_s3 = inlined_call_operand.hbm [shape: f32[1,128], index: 3, kind: input, shape index: {}]   ;;  %s633_s4 = inlined_call_operand.hbm [shape: f32[2,128], index: 4, kind: output, shape index: {}]  }
   0x1   :  { %10 = vsyncpa [#allocation7], 0 }
   0x2   :  { %11 = vsyncpa [#allocation10], 0 }
   0x3   :  { %12 = vsyncpa [#allocation5], 0  ;;  %s522_s15 = smov [#allocation6]   ;;  %s523_s17 = smov [#allocation3]  }
   0x4   :  { %s30_s16 = sshll.u32 %s522_s15, 4  ;;  %s18_s18 = sshll.u32 %s523_s17, 4  ;;  %s31_s16 = int_to_ptr.vmem [resolvable:$true] %s30_s16  ;;  %s558_s18 = int_to_ptr.vmem [resolvable:$true] %s18_s18 }
   0x5   :  { %s404_s21 = scalar_lea.hbm %s630_s1, 128 }
   0x6   :  { %p405_p0 = scmp.ne.s32.totalorder %s630_s1, %s404_s21  ;;  %p408_p1 = scmp.lt.u32.totalorder %s404_s21, %s630_s1 }
   0x8   :  { %p410_p2 = pnand %p408_p1, %p405_p0 }
   0xa   :  { %413 = shalt.err (!%p410_p2)
}
   0xb   :  { %s414_s26 = scalar_lea.vmem %s31_s16, 128  ;;  %p419_p4 = scmp.lt.s32.totalorder %s31_s16, %s31_s16 }
   0xc   :  { %p415_p3 = scmp.ne.s32.totalorder %s31_s16, %s414_s26  ;;  %p420_p5 = scmp.lt.s32.totalorder %s414_s26, %s414_s26 }
   0xe   :  { %p421_p6 = por %p420_p5, %p419_p4 }
  0x10   :  { %p422_p7 = pnand %p421_p6, %p415_p3 }
  0x12   :  { %425 = shalt.err (!%p422_p7)
}
  0x13   :  { %s524_s27 = smov 64   ;;  %s525_s28 = smov 4  }
  0x14   :  { %36 = dma.hbm_to_vmem [thread:$0]  %s630_s1, 128, %s31_s16, [#allocation7], %s524_s27, %s524_s27, %s525_s28  }
  0x15   :  { %s426_s7 = scalar_lea.hbm %s629_s0, 128 }
  0x16   :  { %p427_p8 = scmp.ne.s32.totalorder %s629_s0, %s426_s7  ;;  %p430_p9 = scmp.lt.u32.totalorder %s426_s7, %s629_s0 }
  0x18   :  { %p432_p10 = pnand %p430_p9, %p427_p8 }
  0x1a   :  { %435 = shalt.err (!%p432_p10)
}
  0x1b   :  { %s436_s12 = scalar_lea.vmem %s558_s18, 128  ;;  %p441_p12 = scmp.lt.s32.totalorder %s558_s18, %s558_s18 }
  0x1c   :  { %p437_p11 = scmp.ne.s32.totalorder %s558_s18, %s436_s12  ;;  %p442_p13 = scmp.lt.s32.totalorder %s436_s12, %s436_s12 }
  0x1e   :  { %p443_p0 = por %p442_p13, %p441_p12 }
  0x20   :  { %p444_p1 = pnand %p443_p0, %p437_p11 }
  0x22   :  { %447 = shalt.err (!%p444_p1)
}
  0x23   :  { %24 = dma.hbm_to_vmem [thread:$0]  %s629_s0, 128, %s558_s18, [#allocation4], %s524_s27, %s524_s27, %s525_s28  }
  0x24   :  { %s526_s14 = smov [#allocation8]   ;;  %s448_s19 = scalar_lea.hbm %s631_s2, 4096 }
  0x25   :  { %s42_s15 = sshll.u32 %s526_s14, 4  ;;  %p449_p2 = scmp.ne.s32.totalorder %s631_s2, %s448_s19  ;;  %s43_s15 = int_to_ptr.vmem [resolvable:$true] %s42_s15 }
  0x26   :  { %p452_p3 = scmp.lt.u32.totalorder %s448_s19, %s631_s2 }
  0x28   :  { %p454_p4 = pnand %p452_p3, %p449_p2 }
  0x2a   :  { %457 = shalt.err (!%p454_p4)
}
  0x2b   :  { %s458_s24 = scalar_lea.vmem %s43_s15, 4096  ;;  %p463_p6 = scmp.lt.s32.totalorder %s43_s15, %s43_s15 }
  0x2c   :  { %p459_p5 = scmp.ne.s32.totalorder %s43_s15, %s458_s24  ;;  %p464_p7 = scmp.lt.s32.totalorder %s458_s24, %s458_s24 }
  0x2e   :  { %p465_p8 = por %p464_p7, %p463_p6 }
  0x30   :  { %p466_p9 = pnand %p465_p8, %p459_p5 }
  0x32   :  { %469 = shalt.err (!%p466_p9)
}
  0x33   :  { %s527_s0 = smov 128   ;;  %s528_s18 = smov 8  }
  0x34   :  { %48 = dma.hbm_to_vmem [thread:$0]  %s631_s2, 4096, %s43_s15, [#allocation7], %s527_s0, %s527_s0, %s528_s18  }
  0x35   :  { %s529_s27 = smov [#allocation9]   ;;  %s470_s5 = scalar_lea.hbm %s632_s3, 16 }
  0x36   :  { %s55_s28 = sshll.u32 %s529_s27, 4  ;;  %p471_p10 = scmp.ne.s32.totalorder %s632_s3, %s470_s5  ;;  %s56_s28 = int_to_ptr.vmem [resolvable:$true] %s55_s28 }
  0x37   :  { %p474_p11 = scmp.lt.u32.totalorder %s470_s5, %s632_s3 }
  0x39   :  { %p476_p12 = pnand %p474_p11, %p471_p10 }
  0x3b   :  { %479 = shalt.err (!%p476_p12)
}
  0x3c   :  { %s480_s10 = scalar_lea.vmem %s56_s28, 16  ;;  %s484_s2 = scalar_lea.vmem %s56_s28, 32 }
  0x3d   :  { %p481_p13 = scmp.ne.s32.totalorder %s56_s28, %s480_s10  ;;  %p485_p0 = scmp.lt.s32.totalorder %s56_s28, %s56_s28 }
  0x3e   :  { %p486_p1 = scmp.lt.s32.totalorder %s484_s2, %s480_s10 }
  0x40   :  { %p487_p2 = por %p486_p1, %p485_p0 }
  0x42   :  { %p488_p3 = pnand %p487_p2, %p481_p13 }
  0x44   :  { %491 = shalt.err (!%p488_p3)
}
  0x45   :  { %58 = dma.hbm_to_vmem [thread:$0]  %s632_s3, 16, %s56_s28, [#allocation10]  }
  0x46   :  { %514 = dma.done.wait [#allocation4], 128  }
  0x47   :  { %515 = vsyncadd [#allocation4], 4294967168 }
  0x48   :  { %516 = dma.done.wait [#allocation7], 4224  }
  0x49   :  { %517 = vsyncadd [#allocation7], 4294963072 }
  0x4a   :  { %518 = dma.done.wait [#allocation10], 16  }
  0x4b   :  { %519 = vsyncadd [#allocation10], 4294967280  ;;  %v530_v0 = vmov 0.0   ;;  %v195_v1 = vld [vmem:[#allocation8 + $0x80] sm:$0xff]  ;;  %v196_v2 = vld [vmem:[#allocation8 + $0x88] sm:$0xff]  ;;  %vm81_vm0 = vcmask 261120   ;;  %v101_v31 = vlaneseq }
  0x4c   :  { %75 = vst [vmem:[#allocation2] sm:$0xf] %v530_v0  ;;  %v179_v3 = vld [vmem:[#allocation8] sm:$0xff]  ;;  %v361_v4 = vpack.c.bf16 %v196_v2, %v195_v1  ;;  %v180_v5 = vld [vmem:[#allocation8 + $0x8] sm:$0xff]  ;;  %v197_v6 = vld [vmem:[#allocation8 + $0x90] sm:$0xff]  ;;  %vm117_vm1 = vcmask 1041409  }
  0x4d   :  { %v198_v7 = vld [vmem:[#allocation8 + $0x98] sm:$0xff]  ;;  %v363_v8 = vpack.c.bf16 %v180_v5, %v179_v3  ;;  %v181_v10 = vld [vmem:[#allocation8 + $0x10] sm:$0xff]  ;;  %v199_v12 = vld [vmem:[#allocation8 + $0xa0] sm:$0xff]  ;;  %v531_v39 = vmov 1983009808   ;;  %v102_v62 = vshrl.u32 %v101_v31, 7 }
  0x4e   :  { %v365_v9 = vpack.c.bf16 %v198_v7, %v197_v6  ;;  %v182_v11 = vld [vmem:[#allocation8 + $0x18] sm:$0xff]  ;;  %362 = vmatprep.subr.bf16.mxu0 %v361_v4  ;;  %v200_v13 = vld [vmem:[#allocation8 + $0xa8] sm:$0xff]  ;;  %v183_v16 = vld [vmem:[#allocation8 + $0x20] sm:$0xff]  ;;  %v99_v40 = vunpack.c.l.s4 %v531_v39  ;;  %vm119_vm2 = vcmask 1043459   ;;  %vm121_vm3 = vcmask 1045509   ;;  %s532_s3 = smov [#allocation11]  }
  0x4f   :  { %364 = vmatpush3.bf16.msra.mxu0 %v363_v8  ;;  %v367_v14 = vpack.c.bf16 %v182_v11, %v181_v10  ;;  %v369_v15 = vpack.c.bf16 %v200_v13, %v199_v12  ;;  %v184_v17 = vld [vmem:[#allocation8 + $0x28] sm:$0xff]  ;;  %v201_v18 = vld [vmem:[#allocation8 + $0xb0] sm:$0xff]  ;;  %v202_v19 = vld [vmem:[#allocation8 + $0xb8] sm:$0xff]  ;;  %vm123_vm4 = vcmask 1047559   ;;  %vm127_vm5 = vcmask 254976   ;;  %s306_s1 = sshll.u32 %s532_s3, 4  ;;  %s307_s1 = int_to_ptr.vmem [resolvable:$true] %s306_s1 }
  0x50   :  { %366 = vmatprep.subr.bf16.mxu0 %v365_v9  ;;  %v371_v20 = vpack.c.bf16 %v184_v17, %v183_v16  ;;  %v373_v21 = vpack.c.bf16 %v202_v19, %v201_v18  ;;  %v185_v22 = vld [vmem:[#allocation8 + $0x30] sm:$0xff]  ;;  %v186_v23 = vld [vmem:[#allocation8 + $0x38] sm:$0xff]  ;;  %v203_v24 = vld [vmem:[#allocation8 + $0xc0] sm:$0xff]  ;;  %v100_v61 = vunpack.c.0.s8 %v99_v40  ;;  %s492_s13 = scalar_lea.vmem %s307_s1, 32  ;;  %p497_p5 = scmp.lt.s32.totalorder %s307_s1, %s307_s1 }
  0x51   :  { %v204_v25 = vld [vmem:[#allocation8 + $0xc8] sm:$0xff]  ;;  %v319_v26 = vld [vmem:[#allocation3] sm:$0xff]   ;;  %v323_v29 = vld [vmem:[#allocation6] sm:$0xff]   ;;  %v375_v30 = vpack.c.bf16 %v186_v23, %v185_v22  ;;  %p493_p4 = scmp.ne.s32.totalorder %s307_s1, %s492_s13  ;;  %p498_p6 = scmp.lt.s32.totalorder %s492_s13, %s492_s13 }
  0x52   :  { %v320_v27 = vunpack.c.l.bf16 %v319_v26  ;;  %v321_v28 = vunpack.c.h.bf16 %v319_v26  ;;  %v324_v32 = vunpack.c.l.bf16 %v323_v29  ;;  %v325_v33 = vunpack.c.h.bf16 %v323_v29  ;;  %v187_v35 = vld [vmem:[#allocation8 + $0x40] sm:$0xff]  ;;  %v188_v36 = vld [vmem:[#allocation8 + $0x48] sm:$0xff]  ;;  %v205_v41 = vld [vmem:[#allocation8 + $0xd0] sm:$0xff] }
  0x53   :  { %368 = vmatpush3.bf16.msra.mxu0 %v367_v14  ;;  %v377_v34 = vpack.c.bf16 %v204_v25, %v203_v24  ;;  %v206_v42 = vld [vmem:[#allocation8 + $0xd8] sm:$0xff]  ;;  %v379_v49 = vpack.c.bf16 %v188_v36, %v187_v35  ;;  %v189_v53 = vld [vmem:[#allocation8 + $0x50] sm:$0xff]  ;;  %v207_v57 = vld [vmem:[#allocation8 + $0xe0] sm:$0xff]  ;;  %v103_v13 = vsub.s32 %v100_v61, %v102_v62  ;;  %p499_p7 = por %p498_p6, %p497_p5 }
  0x54   :  { %370 = vmatprep.subr.bf16.mxu0 %v369_v15  ;;  %v82_v37 = vsel %vm81_vm0, %v320_v27, 0.0  ;;  %v89_v38 = vsel %vm81_vm0, %v321_v28, 0.0  ;;  %v134_v45 = vsel %vm81_vm0, %v324_v32, 0.0  ;;  %v141_v46 = vsel %vm81_vm0, %v325_v33, 0.0  ;;  %v190_v54 = vld [vmem:[#allocation8 + $0x58] sm:$0xff]  ;;  %v208_v58 = vld [vmem:[#allocation8 + $0xe8] sm:$0xff] }
  0x55   :  { %v83_v43 = vrot.slane %v82_v37, 4  ;;  %v90_v44 = vrot.slane %v89_v38, 4  ;;  %v135_v47 = vrot.slane %v134_v45, 4  ;;  %v142_v48 = vrot.slane %v141_v46, 4  ;;  %v191_v5 = vld [vmem:[#allocation8 + $0x60] sm:$0xff]  ;;  %v192_v6 = vld [vmem:[#allocation8 + $0x68] sm:$0xff]  ;;  %p500_p8 = pnand %p499_p7, %p493_p4 }
  0x56   :  { %v381_v52 = vpack.c.bf16 %v206_v42, %v205_v41  ;;  %v383_v1 = vpack.c.bf16 %v190_v54, %v189_v53  ;;  %v385_v4 = vpack.c.bf16 %v208_v58, %v207_v57  ;;  %v209_v9 = vld [vmem:[#allocation8 + $0xf0] sm:$0xff]  ;;  %v210_v10 = vld [vmem:[#allocation8 + $0xf8] sm:$0xff]  ;;  %v387_v16 = vpack.c.bf16 %v192_v6, %v191_v5  ;;  %v80_v32 = vld [vmem:[#allocation2] sm:$0x3] }
  0x57   :  { %372 = vmatpush3.bf16.msra.mxu0 %v371_v20  ;;  %v84_v50 = vadd.f32 %v83_v43, %v82_v37  ;;  %v91_v51 = vadd.f32 %v90_v44, %v89_v38  ;;  %v136_v55 = vadd.f32 %v135_v47, %v134_v45  ;;  %v143_v56 = vadd.f32 %v142_v48, %v141_v46  ;;  %v193_v20 = vld [vmem:[#allocation8 + $0x70] sm:$0xff]  ;;  %v133_v36 = vld [vmem:[#allocation2 + $0x2] sm:$0x3]  ;;  %v317_v48 = vld [vmem:[#allocation9] ss:$0 sm:$0xff] }
  0x58   :  { %374 = vmatprep.subr.bf16.mxu0 %v373_v21  ;;  %v389_v19 = vpack.c.bf16 %v210_v10, %v209_v9  ;;  %v194_v21 = vld [vmem:[#allocation8 + $0x78] sm:$0xff] }
  0x59   :  { %v85_v59 = vrot.slane %v84_v50, 2  ;;  %v92_v60 = vrot.slane %v91_v51, 2  ;;  %v137_v63 = vrot.slane %v136_v55, 2  ;;  %v144_v0 = vrot.slane %v143_v56, 2 }
  0x5a   :  { %v391_v28 = vpack.c.bf16 %v194_v21, %v193_v20 }
  0x5b   :  { %376 = vmatpush3.bf16.msra.mxu0 %v375_v30  ;;  %v86_v2 = vadd.f32 %v85_v59, %v84_v50  ;;  %v93_v3 = vadd.f32 %v92_v60, %v91_v51  ;;  %v138_v7 = vadd.f32 %v137_v63, %v136_v55  ;;  %v145_v8 = vadd.f32 %v144_v0, %v143_v56 }
  0x5c   :  { %378 = vmatprep.subr.bf16.mxu0 %v377_v34 }
  0x5d   :  { %v87_v11 = vrot.slane %v86_v2, 1  ;;  %v94_v12 = vrot.slane %v93_v3, 1  ;;  %v139_v14 = vrot.slane %v138_v7, 1  ;;  %v146_v15 = vrot.slane %v145_v8, 1 }
  0x5f   :  { %380 = vmatpush3.bf16.msra.mxu0 %v379_v49  ;;  %v88_v17 = vadd.f32 %v87_v11, %v86_v2  ;;  %v95_v18 = vadd.f32 %v94_v12, %v93_v3  ;;  %v140_v22 = vadd.f32 %v139_v14, %v138_v7  ;;  %v147_v23 = vadd.f32 %v146_v15, %v145_v8 }
  0x60   :  { %382 = vmatprep.subr.bf16.mxu0 %v381_v52 }
  0x61   :  { %v104_v24 = vrot.slane %v88_v17, %v103_v13  ;;  %v111_v25 = vrot.slane %v95_v18, %v103_v13  ;;  %v156_v26 = vrot.slane %v140_v22, %v103_v13  ;;  %v163_v27 = vrot.slane %v147_v23, %v103_v13 }
  0x63   :  { %384 = vmatpush3.bf16.msra.mxu0 %v383_v1  ;;  %v116_v29 = vrot.slane %v111_v25, 7  ;;  %v166_v30 = vrot.slane %v163_v27, 7 }
  0x64   :  { %386 = vmatprep.subr.bf16.mxu0 %v385_v4 }
  0x65   :  { %v118_v31 = vsel %vm117_vm1, %v116_v29, %v104_v24  ;;  %v167_v34 = vsel %vm117_vm1, %v166_v30, %v156_v26 }
  0x66   :  { %v120_v33 = vsel %vm119_vm2, %v116_v29, %v118_v31  ;;  %v168_v37 = vsel %vm119_vm2, %v166_v30, %v167_v34 }
  0x67   :  { %388 = vmatpush3.bf16.msra.mxu0 %v387_v16  ;;  %v122_v35 = vsel %vm121_vm3, %v116_v29, %v120_v33  ;;  %v169_v39 = vsel %vm121_vm3, %v166_v30, %v168_v37 }
  0x68   :  { %390 = vmatprep.subr.bf16.mxu0 %v389_v19  ;;  %v124_v38 = vsel %vm123_vm4, %v116_v29, %v122_v35  ;;  %v170_v41 = vsel %vm123_vm4, %v166_v30, %v169_v39 }
  0x69   :  { %v126_v40 = vadd.f32 %v124_v38, %v80_v32  ;;  %v172_v42 = vadd.f32 %v170_v41, %v133_v36 }
  0x6b   :  { %392 = vmatpush3.bf16.msra.mxu0 %v391_v28  ;;  %128 = vst.msk [vmem:[#allocation2] sm:$0x3] %vm127_vm5, %v126_v40  ;;  %173 = vst.msk [vmem:[#allocation2 + $0x2] sm:$0x3] %vm127_vm5, %v172_v42 }
  0x72   :  { %v177_v43 = vld [vmem:[#allocation2] sm:$0xf] }
  0x73   :  { %v178_v44 = vmul.f32 0.125, %v177_v43 }
  0x75   :  { %v225_v45 = vrot.slane %v178_v44, %v103_v13 }
  0x77   :  { %v226_v46 = vcombine.high %v225_v45, %v225_v45 }
  0x79   :  { %293 = vmatprep.mubr.f32.mxu0 %v226_v46 }
  0x7a   :  { %294 = vmatmul.mubr.f32.vlgmr.msra.gmra.mrb[0].mxu0 %v225_v45 }
 0x14d   :  { %v358_v47 = vpop.f32.mrb[0].mxu0 }
 0x14e   :  { %v359_v49 = vpop.f32.mrb[1].mxu0 }
 0x14f   :  { %v360_v50 = vadd.f32 %v359_v49, %v358_v47 }
 0x151   :  { %v296_v51 = vadd.f32 %v360_v50, %v317_v48 }
 0x153   :  { %299 = vst [vmem:[#allocation11] sm:$0x3] %v296_v51 }
 0x154   :  { %503 = shalt.err (!%p500_p8)
}
 0x155   :  { %s504_s16 = scalar_lea.hbm %s633_s4, 32 }
 0x156   :  { %p505_p9 = scmp.ne.s32.totalorder %s633_s4, %s504_s16  ;;  %p508_p10 = scmp.lt.u32.totalorder %s504_s16, %s633_s4 }
 0x158   :  { %p510_p11 = pnand %p508_p10, %p505_p9 }
 0x15a   :  { %513 = shalt.err (!%p510_p11)
}
 0x15b   :  { %309 = dma.vmem_to_hbm [thread:$0]  %s307_s1, 32, %s633_s4, [#allocation5]  }
 0x15c   :  { %520 = dma.done.wait [#allocation5], 32  }
 0x15d   :  { %521 = vsyncadd [#allocation5], 4294967264 }
 0x15e   :  { %313 = vsyncpa [#allocation4], 1 }
 0x15f   :  { %314 = vsyncpa [#allocation7], 1 }
 0x160   :  { %315 = vsyncpa [#allocation10], 1 }
 0x161   :  { %316 = vsyncpa [#allocation5], 1 }

</bundles_post_ra>
